<compile_context>
chip_gen: v5e
topology: v5e:2x2
jax: 0.10.0
libtpu: 0.0.40
codegen_flags: <defaults>
</compile_context>

<pallas_src>
import functools

import jax
import jax.numpy as jnp
from jax.experimental import pallas as pl
from jax.experimental.pallas import tpu as pltpu


# ----------------------------------------------------------------------------- kernel
def _pscn_kernel(x_ref, w1a_ref, w1m_ref, w2a_ref, w2m_ref, o_ref,
                 sum_sc, max_sc, *, p_total, lanes, n_groups):
    p = pl.program_id(1)

    # ---- init lane-partial accumulators at the first P step -------------------
    @pl.when(p == 0)
    def _():
        sum_sc[...] = jnp.zeros_like(sum_sc)
        max_sc[...] = jnp.full_like(max_sc, -jnp.inf)

    # ---- streaming pooling: pure VPU elementwise work in the hot loop ---------
    # Fold each 128-lane group of this P tile into the (B_TILE, C, lanes)
    # partials; defer the lanes->1 XLU reduce to the finalize step.
    for g in range(n_groups):
        xg = x_ref[:, :, g * lanes:(g + 1) * lanes].astype(jnp.float32)
        sum_sc[...] = sum_sc[...] + xg
        max_sc[...] = jnp.maximum(max_sc[...], xg)

    # ---- finalize at the last P step -------------------------------------------
    @pl.when(p == pl.num_programs(1) - 1)
    def _():
        avg = jnp.sum(sum_sc[...], axis=-1) * jnp.float32(1.0 / p_total)  # (B_TILE, C)
        mx = jnp.max(max_sc[...], axis=-1)                                # (B_TILE, C)

        w1a = w1a_ref[...]                                                # (C, Ch)
        w1m = w1m_ref[...]                                                # (C, Ch)
        w2a = w2a_ref[...]                                                # (Ch, Cout)
        w2m = w2m_ref[...]                                                # (Ch, Cout)

        # bf16 weights go to the MXU natively; otherwise compute in f32.
        mm_dtype = jnp.bfloat16 if w1a.dtype == jnp.bfloat16 else jnp.float32

        ha = jnp.maximum(jnp.dot(avg.astype(mm_dtype), w1a,
                                 preferred_element_type=jnp.float32), 0.0)
        hm = jnp.maximum(jnp.dot(mx.astype(mm_dtype), w1m,
                                 preferred_element_type=jnp.float32), 0.0)
        y = (jnp.dot(ha.astype(mm_dtype), w2a, preferred_element_type=jnp.float32)
             + jnp.dot(hm.astype(mm_dtype), w2m, preferred_element_type=jnp.float32))
        o_ref[...] = jax.nn.sigmoid(y).astype(o_ref.dtype)


# ----------------------------------------------------------------------------- weight prep
def prepare_pscn_weights(w1_fc1, w2_fc1, w1_fc2, w2_fc2):
    """One-time parameter prep (hoisted out of the per-call path).

    Conv1d(k=1) weights with the kernel dim squeezed:
      w1_fc1, w1_fc2 : (C//2, C)      first conv of the avg / max branch
      w2_fc1, w2_fc2 : (Cout, C//2)   second conv of the avg / max branch

    Returns (w1a, w1m, w2a, w2m) -- plain transposes, so the kernel computes
      sigmoid(relu(avg @ w1a) @ w2a + relu(mx @ w1m) @ w2m).
    No block-diagonal fusion / concat: avoids multiplying explicit zeros, avoids
    cross-lane concats when C % 128 != 0, and halves the stage-1 weight footprint.
    """
    return (jnp.asarray(w1_fc1.T), jnp.asarray(w1_fc2.T),
            jnp.asarray(w2_fc1.T), jnp.asarray(w2_fc2.T))


# ----------------------------------------------------------------------------- tiling
def _vmem_capacity_bytes():
    try:
        return int(pltpu.get_tpu_info().vmem_capacity_bytes)
    except Exception:
        return 64 * 1024 * 1024  # v7x per-TC VMEM: the smallest across generations


def _p_tile_candidates(P):
    if P % 128 != 0:
        return [P]                                        # full dim is always legal
    cands = [c for c in (2048, 1024, 512, 256, 128) if P % c == 0]
    if P < 2048 and P not in cands:
        cands.insert(0, P)                                # e.g. P = 384, 768, 1920
    return cands                                          # descending: long DMA rows first


def _b_tile_candidates(B):
    cands = [c for c in (256, 128, 64, 32, 16, 8) if c < B and B % c == 0]
    return [B] + cands                                    # B itself is always legal


def _tile_vmem_usage(b_tile, p_tile, C, P, x_itemsize, out_itemsize, w_bytes):
    lanes = 128 if p_tile % 128 == 0 else p_tile
    return (2 * b_tile * C * p_tile * x_itemsize          # x (double-buffered)
            + 2 * w_bytes                                 # weights (double-buffered)
            + 2 * b_tile * P * out_itemsize               # output block
            + 2 * b_tile * C * lanes * 4)                 # sum/max f32 partials


def _select_tiles(B, C, P, x_itemsize, out_itemsize, w_bytes, cap_bytes):
    """VMEM-budget-aware (B_TILE, P_TILE) selection.

    Preference order:
      1. B split into >= 2 blocks ("parallel" axis can shard across both TCs on v7x),
      2. larger P_TILE (longer contiguous DMA rows, fewer grid steps),
      3. larger B_TILE.
    """
    p_cands = _p_tile_candidates(P)
    b_cands = _b_tile_candidates(B)
    b_split = [b for b in b_cands if B // b >= 2]         # megacore-friendly
    b_nosplit = [b for b in b_cands if B // b < 2]

    for b_group in (b_split, b_nosplit):
        for p_tile in p_cands:
            for b_tile in b_group:
                u = _tile_vmem_usage(b_tile, p_tile, C, P,
                                     x_itemsize, out_itemsize, w_bytes)
                if u <= cap_bytes:
                    return b_tile, p_tile, u

    # Nothing fits the cap (huge C * P): take the smallest legal tiles anyway.
    b_tile, p_tile = b_cands[-1], p_cands[-1]
    return b_tile, p_tile, _tile_vmem_usage(b_tile, p_tile, C, P,
                                            x_itemsize, out_itemsize, w_bytes)


# ----------------------------------------------------------------------------- wrapper
def pscn_spatial_attention(x, w1a, w1m, w2a, w2m, *, b_tile=None, p_tile=None):
    """x: (B, C, P); weights from prepare_pscn_weights. Returns (B, 1, P).

    Requires Cout == P (the module's .view()).  If the model tolerates it, feed
    x as bf16 to halve the HBM stream; accumulation is f32 regardless.
    b_tile / p_tile are test-only overrides.
    """
    B, C, P = x.shape
    Ch = w1a.shape[1]
    Cout = w2a.shape[1]
    assert w1a.shape == (C, Ch) and w1m.shape == (C, Ch)
    assert w2a.shape == (Ch, Cout) and w2m.shape == (Ch, Cout)
    assert Cout == P, "module's .view(B, 1, point_num) requires channel_out == point_num"

    x_itemsize = x.dtype.itemsize
    w_bytes = sum(int(w.size) * w.dtype.itemsize for w in (w1a, w1m, w2a, w2m))

    # Per-generation VMEM working-set cap (leave headroom for Mosaic scratch).
    capacity = _vmem_capacity_bytes()
    cap = max(12 << 20, min(24 << 20, capacity // 3))

    B_TILE, P_TILE, est_bytes = _select_tiles(B, C, P, x_itemsize, x_itemsize,
                                              w_bytes, cap)
    if b_tile is not None:
        assert B % b_tile == 0 and (b_tile % 8 == 0 or b_tile == B)
        B_TILE = b_tile
    if p_tile is not None:
        assert P % p_tile == 0 and (p_tile % 128 == 0 or p_tile == P)
        P_TILE = p_tile
    if b_tile is not None or p_tile is not None:
        est_bytes = _tile_vmem_usage(B_TILE, P_TILE, C, P, x_itemsize,
                                     x_itemsize, w_bytes)

    lanes = 128 if P_TILE % 128 == 0 else P_TILE
    n_groups = P_TILE // lanes
    grid = (B // B_TILE, P // P_TILE)

    # Raise the scoped-VMEM limit to cover the chosen tiles (with headroom),
    # bounded away from physical capacity.
    vmem_limit = int(min(max(int(est_bytes * 1.4) + (4 << 20), 32 << 20),
                         capacity - (4 << 20)))

    # Advisory cost for XLA's scheduler (this call is HBM-streaming bound).
    flops = int(B * (4 * C * Ch + 4 * Ch * P + 2 * C * P))
    bytes_accessed = int(x.size * x_itemsize + w_bytes + B * P * x_itemsize)
    cost = pl.CostEstimate(flops=flops, transcendentals=int(B * P),
                           bytes_accessed=bytes_accessed)

    kernel = functools.partial(_pscn_kernel, p_total=P, lanes=lanes,
                               n_groups=n_groups)

    def _wspec(shape):
        return pl.BlockSpec(shape, lambda b, p: (0, 0))

    out_2d = pl.pallas_call(
        kernel,
        out_shape=jax.ShapeDtypeStruct((B, P), x.dtype),
        grid_spec=pltpu.PrefetchScalarGridSpec(
            num_scalar_prefetch=0,
            grid=grid,
            in_specs=[
                # x streamed tile-by-tile (double-buffered by Pallas).
                pl.BlockSpec((B_TILE, C, P_TILE), lambda b, p: (b, 0, p)),
                # Small weights stay VMEM-resident (constant index map).
                _wspec(w1a.shape), _wspec(w1m.shape),
                _wspec(w2a.shape), _wspec(w2m.shape),
            ],
            # Output block constant across the P (reduction) axis: written once
            # at the final P step. Lane-dense (B_TILE, P) layout.
            out_specs=pl.BlockSpec((B_TILE, P), lambda b, p: (b, 0)),
            scratch_shapes=[
                pltpu.VMEM((B_TILE, C, lanes), jnp.float32),  # lane-partial running sum
                pltpu.VMEM((B_TILE, C, lanes), jnp.float32),  # lane-partial running max
            ],
        ),
        compiler_params=pltpu.CompilerParams(
            dimension_semantics=("parallel", "arbitrary"),
            vmem_limit_bytes=vmem_limit),
        cost_estimate=cost,
    )(x, w1a, w1m, w2a, w2m)

    # Free layout plumbing: restore the module's (B, 1, P) output shape.
    return out_2d[:, None, :]


# ----------------------------------------------------------------------------- test
def _reference(x, w1_fc1, w2_fc1, w1_fc2, w2_fc2):
    # Pure-JAX reference mirroring the PyTorch forward.
    avg = jnp.mean(x, axis=-1)                       # (B, C)
    mx = jnp.max(x, axis=-1)                         # (B, C)
    y_a = jnp.maximum(avg @ w1_fc1.T, 0.0) @ w2_fc1.T
    y_m = jnp.maximum(mx @ w1_fc2.T, 0.0) @ w2_fc2.T
    out = jax.nn.sigmoid(y_a + y_m)
    return out[:, None, :]


def _run_case(key, B, C, P, **tile_overrides):
    Cout = P            # required by the module's .view()
    Ch = max(C // 2, 1)
    kx, k1, k2, k3, k4 = jax.random.split(key, 5)
    x = jax.random.normal(kx, (B, C, P), dtype=jnp.float32)
    w1_fc1 = jax.random.normal(k1, (Ch, C), dtype=jnp.float32) * 0.5
    w2_fc1 = jax.random.normal(k2, (Cout, Ch), dtype=jnp.float32) * 0.5
    w1_fc2 = jax.random.normal(k3, (Ch, C), dtype=jnp.float32) * 0.5
    w2_fc2 = jax.random.normal(k4, (Cout, Ch), dtype=jnp.float32) * 0.5

    w1a, w1m, w2a, w2m = prepare_pscn_weights(w1_fc1, w2_fc1, w1_fc2, w2_fc2)
    out = jax.block_until_ready(
        pscn_spatial_attention(x, w1a, w1m, w2a, w2m, **tile_overrides))

    ref = _reference(x, w1_fc1, w2_fc1, w1_fc2, w2_fc2)
    assert out.shape == (B, 1, P), out.shape
    assert jnp.allclose(out, ref, atol=3e-5, rtol=1e-4), "mismatch vs reference"


if __name__ == "__main__":
    key = jax.random.PRNGKey(0)
    k0, k1 = jax.random.split(key)

    # Small shape implied by the forward (channel_out == point_num).
    _run_case(k0, B=2, C=4, P=16)
    # Auto tiling: B split across 2 blocks (megacore-friendly), single P step.
    _run_case(k1, B=16, C=16, P=384)
    # Forced small tiles: exercises the multi-step P accumulation path (grid=(2, 3)).
    _run_case(k1, B=16, C=16, P=384, b_tile=8, p_tile=128)

    print("KERNEL_OK")
</pallas_src>

<mosaic_0001>
module attributes {stable_mosaic.version = 11 : i64} {
  func.func @_pscn_kernel(%arg0: i32, %arg1: i32, %arg2: memref<2x4x16xf32, #tpu.memory_space<vmem>>, %arg3: memref<4x2xf32, #tpu.memory_space<vmem>>, %arg4: memref<4x2xf32, #tpu.memory_space<vmem>>, %arg5: memref<2x16xf32, #tpu.memory_space<vmem>>, %arg6: memref<2x16xf32, #tpu.memory_space<vmem>>, %arg7: memref<2x16xf32, #tpu.memory_space<vmem>>, %arg8: memref<2x4x16xf32, #tpu.memory_space<vmem>>, %arg9: memref<2x4x16xf32, #tpu.memory_space<vmem>>) attributes {dimension_semantics = [#tpu.dimension_semantics<parallel>, #tpu.dimension_semantics<arbitrary>], iteration_bounds = array<i64: 1, 1>, scalar_prefetch = 0 : i64, scratch_operands = 2 : i64, tpu.core_type = #tpu.core_type<tc>, window_params = [{transform_indices = @transform_0, window_bounds = array<i64: 2, 4, 16>}, {pipeline_mode = #tpu.pipeline_mode<synchronous>, transform_indices = @transform_1, window_bounds = array<i64: 4, 2>}, {pipeline_mode = #tpu.pipeline_mode<synchronous>, transform_indices = @transform_2, window_bounds = array<i64: 4, 2>}, {pipeline_mode = #tpu.pipeline_mode<synchronous>, transform_indices = @transform_3, window_bounds = array<i64: 2, 16>}, {pipeline_mode = #tpu.pipeline_mode<synchronous>, transform_indices = @transform_4, window_bounds = array<i64: 2, 16>}, {transform_indices = @transform_5, window_bounds = array<i64: 2, 16>}]} {
    %c0_i32 = arith.constant 0 : i32
    %0 = arith.cmpi eq, %arg1, %c0_i32 : i32
    %1 = arith.extui %0 : i1 to i32
    %c0_i32_0 = arith.constant 0 : i32
    %2 = arith.cmpi ne, %1, %c0_i32_0 : i32
    scf.if %2 {
      %cst = arith.constant 0.000000e+00 : f32
      %13 = vector.broadcast %cst : f32 to vector<2x4x16xf32>
      %c0_17 = arith.constant 0 : index
      %c0_18 = arith.constant 0 : index
      %c0_19 = arith.constant 0 : index
      %14 = vector.load %arg8[%c0_17, %c0_18, %c0_19] : memref<2x4x16xf32, #tpu.memory_space<vmem>>, vector<2x4x16xf32>
      tpu.vector_store %arg8[%c0_17, %c0_18, %c0_19], %13 {strides = array<i32>} : memref<2x4x16xf32, #tpu.memory_space<vmem>>, vector<2x4x16xf32>,
      %cst_20 = arith.constant 0xFF800000 : f32
      %15 = vector.broadcast %cst_20 : f32 to vector<2x4x16xf32>
      %c0_21 = arith.constant 0 : index
      %c0_22 = arith.constant 0 : index
      %c0_23 = arith.constant 0 : index
      %16 = vector.load %arg9[%c0_21, %c0_22, %c0_23] : memref<2x4x16xf32, #tpu.memory_space<vmem>>, vector<2x4x16xf32>
      tpu.vector_store %arg9[%c0_21, %c0_22, %c0_23], %15 {strides = array<i32>} : memref<2x4x16xf32, #tpu.memory_space<vmem>>, vector<2x4x16xf32>,
    } else {
    }
    %c0 = arith.constant 0 : index
    %c0_1 = arith.constant 0 : index
    %c0_2 = arith.constant 0 : index
    %3 = vector.load %arg2[%c0, %c0_1, %c0_2] : memref<2x4x16xf32, #tpu.memory_space<vmem>>, vector<2x4x16xf32>
    %c0_3 = arith.constant 0 : index
    %c0_4 = arith.constant 0 : index
    %c0_5 = arith.constant 0 : index
    %4 = vector.load %arg8[%c0_3, %c0_4, %c0_5] : memref<2x4x16xf32, #tpu.memory_space<vmem>>, vector<2x4x16xf32>
    %5 = arith.addf %4, %3 : vector<2x4x16xf32>
    %c0_6 = arith.constant 0 : index
    %c0_7 = arith.constant 0 : index
    %c0_8 = arith.constant 0 : index
    %6 = vector.load %arg8[%c0_6, %c0_7, %c0_8] : memref<2x4x16xf32, #tpu.memory_space<vmem>>, vector<2x4x16xf32>
    tpu.vector_store %arg8[%c0_6, %c0_7, %c0_8], %5 {strides = array<i32>} : memref<2x4x16xf32, #tpu.memory_space<vmem>>, vector<2x4x16xf32>,
    %c0_9 = arith.constant 0 : index
    %c0_10 = arith.constant 0 : index
    %c0_11 = arith.constant 0 : index
    %7 = vector.load %arg9[%c0_9, %c0_10, %c0_11] : memref<2x4x16xf32, #tpu.memory_space<vmem>>, vector<2x4x16xf32>
    %8 = arith.maximumf %7, %3 : vector<2x4x16xf32>
    %c0_12 = arith.constant 0 : index
    %c0_13 = arith.constant 0 : index
    %c0_14 = arith.constant 0 : index
    %9 = vector.load %arg9[%c0_12, %c0_13, %c0_14] : memref<2x4x16xf32, #tpu.memory_space<vmem>>, vector<2x4x16xf32>
    tpu.vector_store %arg9[%c0_12, %c0_13, %c0_14], %8 {strides = array<i32>} : memref<2x4x16xf32, #tpu.memory_space<vmem>>, vector<2x4x16xf32>,
    %c0_i32_15 = arith.constant 0 : i32
    %10 = arith.cmpi eq, %arg1, %c0_i32_15 : i32
    %11 = arith.extui %10 : i1 to i32
    %c0_i32_16 = arith.constant 0 : i32
    %12 = arith.cmpi ne, %11, %c0_i32_16 : i32
    scf.if %12 {
      %c0_17 = arith.constant 0 : index
      %c0_18 = arith.constant 0 : index
      %c0_19 = arith.constant 0 : index
      %13 = vector.load %arg8[%c0_17, %c0_18, %c0_19] : memref<2x4x16xf32, #tpu.memory_space<vmem>>, vector<2x4x16xf32>
      %cst = arith.constant dense<0.000000e+00> : vector<2x4xf32>
      %14 = vector.multi_reduction <add>, %13, %cst [2] : vector<2x4x16xf32> to vector<2x4xf32>
      %cst_20 = arith.constant 6.250000e-02 : f32
      %15 = vector.broadcast %cst_20 : f32 to vector<2x4xf32>
      %16 = arith.mulf %14, %15 : vector<2x4xf32>
      %c0_21 = arith.constant 0 : index
      %c0_22 = arith.constant 0 : index
      %c0_23 = arith.constant 0 : index
      %17 = vector.load %arg9[%c0_21, %c0_22, %c0_23] : memref<2x4x16xf32, #tpu.memory_space<vmem>>, vector<2x4x16xf32>
      %cst_24 = arith.constant dense<0xFF800000> : vector<2x4xf32>
      %18 = vector.multi_reduction <maximumf>, %17, %cst_24 [2] : vector<2x4x16xf32> to vector<2x4xf32>
      %c0_25 = arith.constant 0 : index
      %c0_26 = arith.constant 0 : index
      %19 = vector.load %arg3[%c0_25, %c0_26] : memref<4x2xf32, #tpu.memory_space<vmem>>, vector<4x2xf32>
      %c0_27 = arith.constant 0 : index
      %c0_28 = arith.constant 0 : index
      %20 = vector.load %arg4[%c0_27, %c0_28] : memref<4x2xf32, #tpu.memory_space<vmem>>, vector<4x2xf32>
      %c0_29 = arith.constant 0 : index
      %c0_30 = arith.constant 0 : index
      %21 = vector.load %arg5[%c0_29, %c0_30] : memref<2x16xf32, #tpu.memory_space<vmem>>, vector<2x16xf32>
      %c0_31 = arith.constant 0 : index
      %c0_32 = arith.constant 0 : index
      %22 = vector.load %arg6[%c0_31, %c0_32] : memref<2x16xf32, #tpu.memory_space<vmem>>, vector<2x16xf32>
      %cst_33 = arith.constant dense<0.000000e+00> : vector<2x2xf32>
      %23 = tpu.matmul %16, %19, %cst_33 {dimension_numbers = #tpu.dot_dimension_numbers<[1], [0], [0], [1], [0, 0, 1, 1], [], []>} : vector<2x4xf32>, vector<4x2xf32>, vector<2x2xf32> -> vector<2x2xf32>
      %cst_34 = arith.constant 0.000000e+00 : f32
      %24 = vector.broadcast %cst_34 : f32 to vector<2x2xf32>
      %25 = arith.maximumf %23, %24 : vector<2x2xf32>
      %cst_35 = arith.constant dense<0.000000e+00> : vector<2x2xf32>
      %26 = tpu.matmul %18, %20, %cst_35 {dimension_numbers = #tpu.dot_dimension_numbers<[1], [0], [0], [1], [0, 0, 1, 1], [], []>} : vector<2x4xf32>, vector<4x2xf32>, vector<2x2xf32> -> vector<2x2xf32>
      %cst_36 = arith.constant 0.000000e+00 : f32
      %27 = vector.broadcast %cst_36 : f32 to vector<2x2xf32>
      %28 = arith.maximumf %26, %27 : vector<2x2xf32>
      %cst_37 = arith.constant dense<0.000000e+00> : vector<2x16xf32>
      %29 = tpu.matmul %25, %21, %cst_37 {dimension_numbers = #tpu.dot_dimension_numbers<[1], [0], [0], [1], [0, 0, 1, 1], [], []>} : vector<2x2xf32>, vector<2x16xf32>, vector<2x16xf32> -> vector<2x16xf32>
      %cst_38 = arith.constant dense<0.000000e+00> : vector<2x16xf32>
      %30 = tpu.matmul %28, %22, %cst_38 {dimension_numbers = #tpu.dot_dimension_numbers<[1], [0], [0], [1], [0, 0, 1, 1], [], []>} : vector<2x2xf32>, vector<2x16xf32>, vector<2x16xf32> -> vector<2x16xf32>
      %31 = arith.addf %29, %30 : vector<2x16xf32>
      %32 = arith.negf %31 : vector<2x16xf32>
      %33 = math.exp %32 : vector<2x16xf32>
      %cst_39 = arith.constant 1.000000e+00 : f32
      %34 = vector.broadcast %cst_39 : f32 to vector<2x16xf32>
      %35 = arith.addf %34, %33 : vector<2x16xf32>
      %36 = arith.divf %34, %35 : vector<2x16xf32>
      %c0_40 = arith.constant 0 : index
      %c0_41 = arith.constant 0 : index
      %37 = vector.load %arg7[%c0_40, %c0_41] : memref<2x16xf32, #tpu.memory_space<vmem>>, vector<2x16xf32>
      tpu.vector_store %arg7[%c0_40, %c0_41], %36 {strides = array<i32>} : memref<2x16xf32, #tpu.memory_space<vmem>>, vector<2x16xf32>,
    } else {
    }
    return
  }
  func.func @transform_0(%arg0: i32, %arg1: i32) -> (i32, i32, i32) {
    %c0_i32 = arith.constant 0 : i32
    %c0_i32_0 = arith.constant 0 : i32
    return %arg0, %c0_i32, %arg1 : i32, i32, i32
  }
  func.func @transform_1(%arg0: i32, %arg1: i32) -> (i32, i32) {
    %c0_i32 = arith.constant 0 : i32
    %c0_i32_0 = arith.constant 0 : i32
    %c0_i32_1 = arith.constant 0 : i32
    return %c0_i32, %c0_i32_0 : i32, i32
  }
  func.func @transform_2(%arg0: i32, %arg1: i32) -> (i32, i32) {
    %c0_i32 = arith.constant 0 : i32
    %c0_i32_0 = arith.constant 0 : i32
    %c0_i32_1 = arith.constant 0 : i32
    return %c0_i32, %c0_i32_0 : i32, i32
  }
  func.func @transform_3(%arg0: i32, %arg1: i32) -> (i32, i32) {
    %c0_i32 = arith.constant 0 : i32
    %c0_i32_0 = arith.constant 0 : i32
    %c0_i32_1 = arith.constant 0 : i32
    return %c0_i32, %c0_i32_0 : i32, i32
  }
  func.func @transform_4(%arg0: i32, %arg1: i32) -> (i32, i32) {
    %c0_i32 = arith.constant 0 : i32
    %c0_i32_0 = arith.constant 0 : i32
    %c0_i32_1 = arith.constant 0 : i32
    return %c0_i32, %c0_i32_0 : i32, i32
  }
  func.func @transform_5(%arg0: i32, %arg1: i32) -> (i32, i32) {
    %c0_i32 = arith.constant 0 : i32
    %c0_i32_0 = arith.constant 0 : i32
    return %arg0, %c0_i32 : i32, i32
  }
}

</mosaic_0001>

<bundles_post_ra>
// kernel: tpu_custom_call.1
= control target key start
LH: loop header
LB: loop body
LE: loop exit
PB: predicated region body
PF: predicated region fallthrough
CT: control target
= control target key end

     0   :  { %vm25_vm0 = vcmask 125952   ;;  %v270_v0 = vmov -inf   ;;  %s336_s0 = inlined_call_operand.vmem [shape: f32[2,4,16], index: 0, kind: input, shape index: {}]   ;;  %s337_s1 = inlined_call_operand.vmem [shape: f32[4,2], index: 1, kind: input, shape index: {}]   ;;  %s338_s2 = inlined_call_operand.vmem [shape: f32[4,2], index: 2, kind: input, shape index: {}]   ;;  %s339_s3 = inlined_call_operand.vmem [shape: f32[2,16], index: 3, kind: input, shape index: {}]   ;;  %s340_s4 = inlined_call_operand.vmem [shape: f32[2,16], index: 4, kind: input, shape index: {}]   ;;  %s341_s5 = inlined_call_operand.hbm [shape: f32[2,16], index: 5, kind: output, shape index: {}]  }
   0x1   :  { %28 = vst.msk [vmem:[#allocation3] sm:$0xf] %vm25_vm0, %v270_v0 }
   0x2   :  { %10 = vsyncpa [#allocation5], 0  ;;  %29 = vst.msk [vmem:[#allocation3 + $0x4] sm:$0xf] %vm25_vm0, %v270_v0  ;;  %v271_v1 = vmov 0.0   ;;  %vm81_vm1 = vcmask 1043456   ;;  %v72_v23 = vlaneseq }
   0x3   :  { %26 = vst.msk [vmem:[#allocation2] sm:$0xf] %vm25_vm0, %v271_v1  ;;  %v30_v2 = vld [vmem:[%s336_s0] sm:$0xf]  ;;  %v31_v3 = vld [vmem:[%s336_s0 + $0x4] sm:$0xf] }
   0x4   :  { %27 = vst.msk [vmem:[#allocation2 + $0x4] sm:$0xf] %vm25_vm0, %v271_v1  ;;  %v67_v20 = vld [vmem:[%s338_s2] sm:$0xf]  ;;  %v73_v25 = vand.u32 127, %v72_v23  ;;  %vm76_vm2 = vcmask 1041409  }
   0x5   :  { %230 = vmatpush.msk.msra.mxu1 %vm81_vm1, %v67_v20  ;;  %v66_v21 = vld [vmem:[%s337_s1] sm:$0xf]  ;;  %vm78_vm3 = vcmask 31744   ;;  %vm141_vm4 = vcmask 1041408   ;;  %vm137_vm5 = vcmask 15360   ;;  %s219_s29 = sshll.u32 %s341_s5, 4  ;;  %s220_s29 = int_to_ptr.hbm [resolvable:$true] %s219_s29 }
   0x6   :  { %228 = vmatpush.msk.msra.mxu0 %vm81_vm1, %v66_v21  ;;  %v69_v36 = vld [vmem:[%s340_s4] sm:$0x3]  ;;  %vm210_vm9 = vcmask 123904  }
   0x7   :  { %232 = vmatpush.msk.msra.mxu2 %vm141_vm4, %v69_v36  ;;  %v68_v37 = vld [vmem:[%s339_s3] sm:$0x3]  ;;  %s272_s3 = smov [#allocation4]  }
   0x8   :  { %v39_v4 = vld [vmem:[#allocation3] sm:$0xf]  ;;  %234 = vmatpush.msk.msra.mxu3 %vm141_vm4, %v68_v37  ;;  %s217_s4 = sshll.u32 %s272_s3, 4  ;;  %s218_s4 = int_to_ptr.vmem [resolvable:$true] %s217_s4 }
   0x9   :  { %v41_v5 = vmax.f32 %v39_v4, %v30_v2  ;;  %v40_v6 = vld [vmem:[#allocation3 + $0x4] sm:$0xf] }
   0xa   :  { %v32_v7 = vld [vmem:[#allocation2] sm:$0xf]  ;;  %v42_v8 = vmax.f32 %v40_v6, %v31_v3 }
   0xb   :  { %43 = vst.msk [vmem:[#allocation3] sm:$0xf] %vm25_vm0, %v41_v5  ;;  %v34_v9 = vadd.f32 %v32_v7, %v30_v2  ;;  %v33_v10 = vld [vmem:[#allocation2 + $0x4] sm:$0xf] }
   0xc   :  { %44 = vst.msk [vmem:[#allocation3 + $0x4] sm:$0xf] %vm25_vm0, %v42_v8  ;;  %v35_v11 = vadd.f32 %v33_v10, %v31_v3 }
   0xd   :  { %37 = vst.msk [vmem:[#allocation2] sm:$0xf] %vm25_vm0, %v34_v9 }
   0xe   :  { %38 = vst.msk [vmem:[#allocation2 + $0x4] sm:$0xf] %vm25_vm0, %v35_v11 }
  0x12   :  { %v58_v12 = vld [vmem:[#allocation3] sm:$0xf] }
  0x13   :  { %v60_v13 = vsel %vm25_vm0, %v58_v12, -inf  ;;  %v59_v16 = vld [vmem:[#allocation3 + $0x4] sm:$0xf] }
  0x14   :  { %61 = vmax.xlane.f32.xlu1 %v60_v13  ;;  %v48_v14 = vld [vmem:[#allocation2] sm:$0xf]  ;;  %v63_v18 = vsel %vm25_vm0, %v59_v16, -inf }
  0x15   :  { %v50_v15 = vsel %vm25_vm0, %v48_v14, 0.0  ;;  %v49_v17 = vld [vmem:[#allocation2 + $0x4] sm:$0xf] }
  0x16   :  { %51 = vadd.xlane.f32.xlu0 %v50_v15  ;;  %v53_v19 = vsel %vm25_vm0, %v49_v17, 0.0 }
  0x1c   :  { %64 = vmax.xlane.f32.xlu1 %v63_v18 }
  0x1e   :  { %54 = vadd.xlane.f32.xlu0 %v53_v19 }
  0x87   :  { %v62_v22 = vpop.xlane.xlu1 %61 }
  0x88   :  { %v108_v27 = vperm.slane %v62_v22, %v73_v25 }
  0x89   :  { %v52_v24 = vpop.xlane.xlu0 %51 }
  0x8a   :  { %v56_v28 = vmul.f32 0.0625, %v52_v24 }
  0x8c   :  { %v74_v33 = vperm.slane %v56_v28, %v73_v25 }
  0x8f   :  { %v65_v26 = vpop.xlane.xlu1 %64 }
  0x90   :  { %v109_v29 = vperm.slane %v65_v26, %v73_v25 }
  0x91   :  { %v55_v30 = vpop.xlane.xlu0 %54 }
  0x92   :  { %v57_v31 = vmul.f32 0.0625, %v55_v30  ;;  %v110_v32 = vsel %vm76_vm2, %v109_v29, %v108_v27 }
  0x93   :  { %231 = vmatmul.msk.f32.vlgmr.msra.gmra.mxu1 %vm78_vm3, %v110_v32 }
  0x94   :  { %v75_v34 = vperm.slane %v57_v31, %v73_v25 }
  0x96   :  { %v77_v35 = vsel %vm76_vm2, %v75_v34, %v74_v33 }
  0x97   :  { %229 = vmatmul.msk.f32.vlgmr.msra.gmra.mxu0 %vm78_vm3, %v77_v35 }
 0x110   :  { %v133_v38 = vpop.f32.mrf.mxu1 }
 0x111   :  { %v136_v39 = vmax.f32 %v133_v38, 0.0 }
 0x113   :  { %233 = vmatmul.msk.f32.vlgmr.msra.gmra.mxu2 %vm137_vm5, %v136_v39 }
 0x114   :  { %v102_v40 = vpop.f32.mrf.mxu0 }
 0x115   :  { %v105_v41 = vmax.f32 %v102_v40, 0.0 }
 0x117   :  { %235 = vmatmul.msk.f32.vlgmr.msra.gmra.mxu3 %vm137_vm5, %v105_v41 }
 0x196   :  { %v162_v42 = vpop.f32.mrf.mxu2 }
 0x19a   :  { %v188_v43 = vpop.f32.mrf.mxu3 }
 0x19b   :  { %v189_v44 = vadd.f32 %v188_v43, %v162_v42 }
 0x19d   :  { %v236_v45 = vmul.f32 -1.442695, %v189_v44 }
 0x19f   :  { %240 = vpow2.f32 %v236_v45 }
 0x1a5   :  { %v241_v46 = vpop.eup %240 }
 0x1a6   :  { %v194_v47 = vadd.f32 1.0, %v241_v46 }
 0x1a8   :  { %242 = vrcp.f32 %v194_v47  ;;  %v206_v51 = vand.u32 2147483648, %v194_v47  ;;  %v204_v53 = vand.u32 2147483647, %v194_v47  ;;  %vm200_vm7 = vweird.f32 %v194_v47 }
 0x1aa   :  { %v207_v55 = vor.u32 1.1754944e-38, %v206_v51  ;;  %vm205_vm10 = vcmp.eq.f32.partialorder %v204_v53, 8.507059e+37 }
 0x1ae   :  { %v243_v48 = vpop.eup %242 }
 0x1af   :  { %v196_v49 = vmul.f32 %v243_v48, %v194_v47  ;;  %vm201_vm6 = vweird.f32 %v243_v48 }
 0x1b0   :  { %vm202_vm8 = vmor %vm200_vm7, %vm201_vm6 }
 0x1b1   :  { %v197_v50 = vsub.f32 1.0, %v196_v49 }
 0x1b3   :  { %v198_v52 = vmul.f32 %v243_v48, %v197_v50 }
 0x1b5   :  { %v199_v54 = vadd.f32 %v243_v48, %v198_v52 }
 0x1b7   :  { %v203_v56 = vsel %vm202_vm8, %v243_v48, %v199_v54 }
 0x1b8   :  { %v208_v57 = vsel %vm205_vm10, %v207_v55, %v203_v56 }
 0x1b9   :  { %211 = vst.msk [vmem:[#allocation4] sm:$0x3] %vm210_vm9, %v208_v57 }
 0x1ba   :  { %222 = dma.vmem_to_hbm [thread:$0]  %s218_s4, 32, %s220_s29, [#allocation5]  }
 0x1bb   :  { %268 = dma.done.wait [#allocation5], 32  }
 0x1bc   :  { %269 = vsyncadd [#allocation5], 4294967264 }
 0x1bd   :  { %227 = vsyncpa [#allocation5], 1 }

</bundles_post_ra>
